<compile_context>
chip_gen: v5e
topology: v5e:2x2
jax: 0.10.0
libtpu: 0.0.40
codegen_flags: <defaults>
</compile_context>

<pallas_src>
import jax
import jax.numpy as jnp
from jax.experimental import pallas as pl
from jax.experimental.pallas import tpu as pltpu

F_IN = 10  # true feature width of the model


# ----------------------------- kernel ------------------------------------- #
def _mlp_softmax_kernel(x_ref, w1_ref, b1_ref, w2_ref, b2_ref,
                        w3_ref, b3_ref, w4_ref, b4_ref, o_ref):
    tb, s, f_in = x_ref.shape
    bf = jnp.bfloat16

    # Fold (TB, S, 10) -> (TB*S, 10): one big M dimension for the MXU.
    # bf16 cast happens here in VMEM (no inflated HBM copy of x).
    x = x_ref[...].astype(bf).reshape(tb * s, f_in)

    # fc1 -> relu   (K=10 contraction; Mosaic pads the MXU tiles internally)
    h = jnp.dot(x, w1_ref[...], preferred_element_type=jnp.float32)
    h = jnp.maximum(h + b1_ref[...], 0.0)

    # fc2 -> relu
    h = jnp.dot(h.astype(bf), w2_ref[...], preferred_element_type=jnp.float32)
    h = jnp.maximum(h + b2_ref[...], 0.0)

    # fc3 -> relu
    h = jnp.dot(h.astype(bf), w3_ref[...], preferred_element_type=jnp.float32)
    h = jnp.maximum(h + b3_ref[...], 0.0)

    # fc4 (10 output lanes)
    logits = jnp.dot(h.astype(bf), w4_ref[...],
                     preferred_element_type=jnp.float32)
    logits = logits + b4_ref[...]                            # (TB*S, 10)

    # Softmax over the sequence axis (dim=1 of the original (B, S, 10)).
    logits = logits.reshape(tb, s, f_in)
    m = jnp.max(logits, axis=1, keepdims=True)
    e = jnp.exp(logits - m)
    denom = jnp.sum(e, axis=1, keepdims=True)                # (TB, 1, 10)
    p = e * pl.reciprocal(denom, approx=True)                # EUP reciprocal

    # Narrow (TB, S, 10) store; permute/reshape done in the wrapper.
    o_ref[...] = p.astype(o_ref.dtype)


# --------------------------- host helpers ---------------------------------- #
def _replicated(arr):
    nd = arr.ndim
    return pl.BlockSpec(arr.shape, lambda i: (0,) * nd)


def _num_tensorcores():
    """Conservative per-chip TensorCore count (2 only on v7x)."""
    try:
        kind = jax.devices()[0].device_kind.lower()
    except Exception:
        return 1
    return 2 if "7" in kind else 1


def _pick_tb(B, S, n_tc):
    """Batch-block size targeting ~2048 MXU rows / grid step.

    Snaps tb to a divisor of B when that costs < 2x in step count (avoids a
    host-side jnp.pad pass over x); on multi-TC parts keeps >= n_tc steps so
    megacore sharding has work for every core.
    """
    target = max(1, 2048 // max(S, 1))
    if n_tc > 1 and B >= n_tc:
        target = min(target, pl.cdiv(B, n_tc))
    target = min(target, B)
    tb = target
    while tb > 1 and B % tb:
        tb -= 1
    if 2 * tb <= target:        # largest divisor too small -> pad instead
        tb = target
    return tb, pl.cdiv(B, tb) * tb


def target_allocation_forward(x, params, *, tb=None):
    """x: (B, S, 10) float32. Returns (B*10, S) float32."""
    B, S, F = x.shape
    assert F == F_IN
    (w1, b1), (w2, b2), (w3, b3), (w4, b4) = params

    # One-time bf16 weight casts (tiny: ~0.5 MiB total).
    bf = jnp.bfloat16
    w1_c, w2_c, w3_c, w4_c = (w.astype(bf) for w in (w1, w2, w3, w4))

    if tb is None:
        tb, b_pad = _pick_tb(B, S, _num_tensorcores())
    else:
        tb = max(1, min(tb, B))
        b_pad = pl.cdiv(B, tb) * tb

    x_in = x
    if b_pad != B:
        x_in = jnp.pad(x, ((0, b_pad - B), (0, 0), (0, 0)))

    grid = (b_pad // tb,)

    out = pl.pallas_call(
        _mlp_softmax_kernel,
        out_shape=jax.ShapeDtypeStruct((b_pad, S, F_IN), jnp.float32),
        grid=grid,
        in_specs=[
            pl.BlockSpec((tb, S, F_IN), lambda i: (i, 0, 0)),   # x block
            _replicated(w1_c), _replicated(b1),
            _replicated(w2_c), _replicated(b2),
            _replicated(w3_c), _replicated(b3),
            _replicated(w4_c), _replicated(b4),
        ],
        out_specs=pl.BlockSpec((tb, S, F_IN), lambda i: (i, 0, 0)),
        compiler_params=pltpu.CompilerParams(
            dimension_semantics=("parallel",),
            vmem_limit_bytes=32 * 1024 * 1024),
    )(x_in, w1_c, b1, w2_c, b2, w3_c, b3, w4_c, b4)

    # Drop batch padding, then permute(0,2,1).reshape(-1, S).
    out = out[:B]                            # (B, S, 10)
    out = jnp.transpose(out, (0, 2, 1))      # (B, 10, S)
    return out.reshape(-1, S)                # (B*10, S)


# ----------------------- params / reference -------------------------------- #
def init_params(key):
    """Deterministic parameter init matching nn.Linear shapes.
    Weights stored as (in, out); biases as (1, out) for clean 2-D broadcast."""
    dims = [(10, 512), (512, 256), (256, 128), (128, 10)]
    params = []
    for din, dout in dims:
        kw, kb, key = jax.random.split(key, 3)
        bound = 1.0 / (din ** 0.5)
        w = jax.random.uniform(kw, (din, dout), jnp.float32, -bound, bound)
        b = jax.random.uniform(kb, (1, dout), jnp.float32, -bound, bound)
        params.append((w, b))
    return params


def _reference_forward(x, params):
    """Pure-JAX reference mirroring the kernel's bf16-in / f32-accum matmuls."""
    (w1, b1), (w2, b2), (w3, b3), (w4, b4) = params
    bf = jnp.bfloat16
    h = jnp.dot(x.astype(bf), w1.astype(bf),
                preferred_element_type=jnp.float32) + b1
    h = jnp.maximum(h, 0.0)
    h = jnp.dot(h.astype(bf), w2.astype(bf),
                preferred_element_type=jnp.float32) + b2
    h = jnp.maximum(h, 0.0)
    h = jnp.dot(h.astype(bf), w3.astype(bf),
                preferred_element_type=jnp.float32) + b3
    h = jnp.maximum(h, 0.0)
    logits = jnp.dot(h.astype(bf), w4.astype(bf),
                     preferred_element_type=jnp.float32) + b4      # (B, S, 10)
    p = jax.nn.softmax(logits, axis=1)                             # dim=1
    p = jnp.transpose(p, (0, 2, 1))                                # (B, 10, S)
    return p.reshape(-1, p.shape[-1])                              # (B*10, S)


if __name__ == "__main__":
    key = jax.random.PRNGKey(0)
    kx, kx2, kp = jax.random.split(key, 3)

    B, S, F = 2, 8, 10
    x = jax.random.normal(kx, (B, S, F), jnp.float32)
    params = init_params(kp)

    out = target_allocation_forward(x, params)
    out = jax.block_until_ready(out)

    ref = _reference_forward(x, params)
    assert out.shape == (B * 10, S), out.shape
    assert jnp.allclose(out, ref, atol=2e-3, rtol=2e-3), \
        float(jnp.max(jnp.abs(out - ref)))

    # Second check: ragged batch with an explicit small tb -> exercises the
    # multi-step grid and the batch-padding path.
    B2 = 20
    x2 = jax.random.normal(kx2, (B2, S, F), jnp.float32)
    out2 = jax.block_until_ready(target_allocation_forward(x2, params, tb=8))
    ref2 = _reference_forward(x2, params)
    assert out2.shape == (B2 * 10, S), out2.shape
    assert jnp.allclose(out2, ref2, atol=2e-3, rtol=2e-3), \
        float(jnp.max(jnp.abs(out2 - ref2)))

    print("KERNEL_OK")
</pallas_src>

<mosaic_0001>
module attributes {stable_mosaic.version = 11 : i64} {
  func.func @_mlp_softmax_kernel(%arg0: i32, %arg1: memref<2x8x10xf32, #tpu.memory_space<vmem>>, %arg2: memref<10x512xbf16, #tpu.memory_space<vmem>>, %arg3: memref<1x512xf32, #tpu.memory_space<vmem>>, %arg4: memref<512x256xbf16, #tpu.memory_space<vmem>>, %arg5: memref<1x256xf32, #tpu.memory_space<vmem>>, %arg6: memref<256x128xbf16, #tpu.memory_space<vmem>>, %arg7: memref<1x128xf32, #tpu.memory_space<vmem>>, %arg8: memref<128x10xbf16, #tpu.memory_space<vmem>>, %arg9: memref<1x10xf32, #tpu.memory_space<vmem>>, %arg10: memref<2x8x10xf32, #tpu.memory_space<vmem>>) attributes {dimension_semantics = [#tpu.dimension_semantics<parallel>], iteration_bounds = array<i64: 1>, scalar_prefetch = 0 : i64, scratch_operands = 0 : i64, tpu.core_type = #tpu.core_type<tc>, window_params = [{transform_indices = @transform_0, window_bounds = array<i64: 2, 8, 10>}, {pipeline_mode = #tpu.pipeline_mode<synchronous>, transform_indices = @transform_1, window_bounds = array<i64: 10, 512>}, {pipeline_mode = #tpu.pipeline_mode<synchronous>, transform_indices = @transform_2, window_bounds = array<i64: 1, 512>}, {pipeline_mode = #tpu.pipeline_mode<synchronous>, transform_indices = @transform_3, window_bounds = array<i64: 512, 256>}, {pipeline_mode = #tpu.pipeline_mode<synchronous>, transform_indices = @transform_4, window_bounds = array<i64: 1, 256>}, {pipeline_mode = #tpu.pipeline_mode<synchronous>, transform_indices = @transform_5, window_bounds = array<i64: 256, 128>}, {pipeline_mode = #tpu.pipeline_mode<synchronous>, transform_indices = @transform_6, window_bounds = array<i64: 1, 128>}, {pipeline_mode = #tpu.pipeline_mode<synchronous>, transform_indices = @transform_7, window_bounds = array<i64: 128, 10>}, {pipeline_mode = #tpu.pipeline_mode<synchronous>, transform_indices = @transform_8, window_bounds = array<i64: 1, 10>}, {transform_indices = @transform_9, window_bounds = array<i64: 2, 8, 10>}]} {
    %c0 = arith.constant 0 : index
    %c0_0 = arith.constant 0 : index
    %c0_1 = arith.constant 0 : index
    %0 = vector.load %arg1[%c0, %c0_0, %c0_1] : memref<2x8x10xf32, #tpu.memory_space<vmem>>, vector<2x8x10xf32>
    %1 = arith.truncf %0 : vector<2x8x10xf32> to vector<2x8x10xbf16>
    %2 = vector.shape_cast %1 : vector<2x8x10xbf16> to vector<16x10xbf16>
    %c0_2 = arith.constant 0 : index
    %c0_3 = arith.constant 0 : index
    %3 = vector.load %arg2[%c0_2, %c0_3] : memref<10x512xbf16, #tpu.memory_space<vmem>>, vector<10x512xbf16>
    %cst = arith.constant dense<0.000000e+00> : vector<16x512xf32>
    %4 = tpu.matmul %2, %3, %cst {dimension_numbers = #tpu.dot_dimension_numbers<[1], [0], [0], [1], [0, 0, 1, 1], [], []>} : vector<16x10xbf16>, vector<10x512xbf16>, vector<16x512xf32> -> vector<16x512xf32>
    %c0_4 = arith.constant 0 : index
    %c0_5 = arith.constant 0 : index
    %5 = vector.load %arg3[%c0_4, %c0_5] : memref<1x512xf32, #tpu.memory_space<vmem>>, vector<1x512xf32>
    %6 = vector.broadcast %5 : vector<1x512xf32> to vector<16x512xf32>
    %7 = arith.addf %4, %6 : vector<16x512xf32>
    %cst_6 = arith.constant 0.000000e+00 : f32
    %8 = vector.broadcast %cst_6 : f32 to vector<16x512xf32>
    %9 = arith.maximumf %7, %8 : vector<16x512xf32>
    %10 = arith.truncf %9 : vector<16x512xf32> to vector<16x512xbf16>
    %c0_7 = arith.constant 0 : index
    %c0_8 = arith.constant 0 : index
    %11 = vector.load %arg4[%c0_7, %c0_8] : memref<512x256xbf16, #tpu.memory_space<vmem>>, vector<512x256xbf16>
    %cst_9 = arith.constant dense<0.000000e+00> : vector<16x256xf32>
    %12 = tpu.matmul %10, %11, %cst_9 {dimension_numbers = #tpu.dot_dimension_numbers<[1], [0], [0], [1], [0, 0, 1, 1], [], []>} : vector<16x512xbf16>, vector<512x256xbf16>, vector<16x256xf32> -> vector<16x256xf32>
    %c0_10 = arith.constant 0 : index
    %c0_11 = arith.constant 0 : index
    %13 = vector.load %arg5[%c0_10, %c0_11] : memref<1x256xf32, #tpu.memory_space<vmem>>, vector<1x256xf32>
    %14 = vector.broadcast %13 : vector<1x256xf32> to vector<16x256xf32>
    %15 = arith.addf %12, %14 : vector<16x256xf32>
    %cst_12 = arith.constant 0.000000e+00 : f32
    %16 = vector.broadcast %cst_12 : f32 to vector<16x256xf32>
    %17 = arith.maximumf %15, %16 : vector<16x256xf32>
    %18 = arith.truncf %17 : vector<16x256xf32> to vector<16x256xbf16>
    %c0_13 = arith.constant 0 : index
    %c0_14 = arith.constant 0 : index
    %19 = vector.load %arg6[%c0_13, %c0_14] : memref<256x128xbf16, #tpu.memory_space<vmem>>, vector<256x128xbf16>
    %cst_15 = arith.constant dense<0.000000e+00> : vector<16x128xf32>
    %20 = tpu.matmul %18, %19, %cst_15 {dimension_numbers = #tpu.dot_dimension_numbers<[1], [0], [0], [1], [0, 0, 1, 1], [], []>} : vector<16x256xbf16>, vector<256x128xbf16>, vector<16x128xf32> -> vector<16x128xf32>
    %c0_16 = arith.constant 0 : index
    %c0_17 = arith.constant 0 : index
    %21 = vector.load %arg7[%c0_16, %c0_17] : memref<1x128xf32, #tpu.memory_space<vmem>>, vector<1x128xf32>
    %22 = vector.broadcast %21 : vector<1x128xf32> to vector<16x128xf32>
    %23 = arith.addf %20, %22 : vector<16x128xf32>
    %cst_18 = arith.constant 0.000000e+00 : f32
    %24 = vector.broadcast %cst_18 : f32 to vector<16x128xf32>
    %25 = arith.maximumf %23, %24 : vector<16x128xf32>
    %26 = arith.truncf %25 : vector<16x128xf32> to vector<16x128xbf16>
    %c0_19 = arith.constant 0 : index
    %c0_20 = arith.constant 0 : index
    %27 = vector.load %arg8[%c0_19, %c0_20] : memref<128x10xbf16, #tpu.memory_space<vmem>>, vector<128x10xbf16>
    %cst_21 = arith.constant dense<0.000000e+00> : vector<16x10xf32>
    %28 = tpu.matmul %26, %27, %cst_21 {dimension_numbers = #tpu.dot_dimension_numbers<[1], [0], [0], [1], [0, 0, 1, 1], [], []>} : vector<16x128xbf16>, vector<128x10xbf16>, vector<16x10xf32> -> vector<16x10xf32>
    %c0_22 = arith.constant 0 : index
    %c0_23 = arith.constant 0 : index
    %29 = vector.load %arg9[%c0_22, %c0_23] : memref<1x10xf32, #tpu.memory_space<vmem>>, vector<1x10xf32>
    %30 = vector.broadcast %29 : vector<1x10xf32> to vector<16x10xf32>
    %31 = arith.addf %28, %30 : vector<16x10xf32>
    %32 = vector.shape_cast %31 : vector<16x10xf32> to vector<2x8x10xf32>
    %cst_24 = arith.constant dense<0xFF800000> : vector<2x10xf32>
    %33 = vector.multi_reduction <maximumf>, %32, %cst_24 [1] : vector<2x8x10xf32> to vector<2x10xf32>
    %34 = vector.shape_cast %33 : vector<2x10xf32> to vector<2x1x10xf32>
    %35 = vector.broadcast %34 : vector<2x1x10xf32> to vector<2x8x10xf32>
    %36 = arith.subf %32, %35 : vector<2x8x10xf32>
    %37 = math.exp %36 : vector<2x8x10xf32>
    %cst_25 = arith.constant dense<0.000000e+00> : vector<2x10xf32>
    %38 = vector.multi_reduction <add>, %37, %cst_25 [1] : vector<2x8x10xf32> to vector<2x10xf32>
    %39 = vector.shape_cast %38 : vector<2x10xf32> to vector<2x1x10xf32>
    %40 = tpu.reciprocal %39 {approx = true} : vector<2x1x10xf32> -> vector<2x1x10xf32>
    %41 = vector.broadcast %40 : vector<2x1x10xf32> to vector<2x8x10xf32>
    %42 = arith.mulf %37, %41 : vector<2x8x10xf32>
    %c0_26 = arith.constant 0 : index
    %c0_27 = arith.constant 0 : index
    %c0_28 = arith.constant 0 : index
    %43 = vector.load %arg10[%c0_26, %c0_27, %c0_28] : memref<2x8x10xf32, #tpu.memory_space<vmem>>, vector<2x8x10xf32>
    tpu.vector_store %arg10[%c0_26, %c0_27, %c0_28], %42 {strides = array<i32>} : memref<2x8x10xf32, #tpu.memory_space<vmem>>, vector<2x8x10xf32>,
    return
  }
  func.func @transform_0(%arg0: i32) -> (i32, i32, i32) {
    %c0_i32 = arith.constant 0 : i32
    %c0_i32_0 = arith.constant 0 : i32
    %c0_i32_1 = arith.constant 0 : i32
    return %arg0, %c0_i32, %c0_i32_0 : i32, i32, i32
  }
  func.func @transform_1(%arg0: i32) -> (i32, i32) {
    %c0_i32 = arith.constant 0 : i32
    %c0_i32_0 = arith.constant 0 : i32
    %c0_i32_1 = arith.constant 0 : i32
    return %c0_i32, %c0_i32_0 : i32, i32
  }
  func.func @transform_2(%arg0: i32) -> (i32, i32) {
    %c0_i32 = arith.constant 0 : i32
    %c0_i32_0 = arith.constant 0 : i32
    %c0_i32_1 = arith.constant 0 : i32
    return %c0_i32, %c0_i32_0 : i32, i32
  }
  func.func @transform_3(%arg0: i32) -> (i32, i32) {
    %c0_i32 = arith.constant 0 : i32
    %c0_i32_0 = arith.constant 0 : i32
    %c0_i32_1 = arith.constant 0 : i32
    return %c0_i32, %c0_i32_0 : i32, i32
  }
  func.func @transform_4(%arg0: i32) -> (i32, i32) {
    %c0_i32 = arith.constant 0 : i32
    %c0_i32_0 = arith.constant 0 : i32
    %c0_i32_1 = arith.constant 0 : i32
    return %c0_i32, %c0_i32_0 : i32, i32
  }
  func.func @transform_5(%arg0: i32) -> (i32, i32) {
    %c0_i32 = arith.constant 0 : i32
    %c0_i32_0 = arith.constant 0 : i32
    %c0_i32_1 = arith.constant 0 : i32
    return %c0_i32, %c0_i32_0 : i32, i32
  }
  func.func @transform_6(%arg0: i32) -> (i32, i32) {
    %c0_i32 = arith.constant 0 : i32
    %c0_i32_0 = arith.constant 0 : i32
    %c0_i32_1 = arith.constant 0 : i32
    return %c0_i32, %c0_i32_0 : i32, i32
  }
  func.func @transform_7(%arg0: i32) -> (i32, i32) {
    %c0_i32 = arith.constant 0 : i32
    %c0_i32_0 = arith.constant 0 : i32
    %c0_i32_1 = arith.constant 0 : i32
    return %c0_i32, %c0_i32_0 : i32, i32
  }
  func.func @transform_8(%arg0: i32) -> (i32, i32) {
    %c0_i32 = arith.constant 0 : i32
    %c0_i32_0 = arith.constant 0 : i32
    %c0_i32_1 = arith.constant 0 : i32
    return %c0_i32, %c0_i32_0 : i32, i32
  }
  func.func @transform_9(%arg0: i32) -> (i32, i32, i32) {
    %c0_i32 = arith.constant 0 : i32
    %c0_i32_0 = arith.constant 0 : i32
    %c0_i32_1 = arith.constant 0 : i32
    return %arg0, %c0_i32, %c0_i32_0 : i32, i32, i32
  }
}

</mosaic_0001>

<bundles_post_ra>
// kernel: tpu_custom_call.1
= control target key start
LH: loop header
LB: loop body
LE: loop exit
PB: predicated region body
PF: predicated region fallthrough
CT: control target
= control target key end

     0   :  { %14 = vsyncpa [#allocation3], 0  ;;  %s1726_s0 = inlined_call_operand.vmem [shape: f32[2,8,10], index: 0, kind: input, shape index: {}]   ;;  %s1727_s1 = inlined_call_operand.vmem [shape: bf16[10,512], index: 1, kind: input, shape index: {}]   ;;  %s1728_s2 = inlined_call_operand.vmem [shape: f32[1,512], index: 2, kind: input, shape index: {}]   ;;  %s1729_s3 = inlined_call_operand.hbm [shape: bf16[512,256], index: 3, kind: input, shape index: {}]   ;;  %s1730_s4 = inlined_call_operand.vmem [shape: f32[1,256], index: 4, kind: input, shape index: {}]   ;;  %s1731_s5 = inlined_call_operand.hbm [shape: bf16[256,128], index: 5, kind: input, shape index: {}]   ;;  %s1732_s6 = inlined_call_operand.vmem [shape: f32[1,128], index: 6, kind: input, shape index: {}]   ;;  %s1733_s7 = inlined_call_operand.vmem [shape: bf16[128,10], index: 7, kind: input, shape index: {}]   ;;  %s1734_s8 = inlined_call_operand.vmem [shape: f32[1,10], index: 8, kind: input, shape index: {}]   ;;  %s1735_s9 = inlined_call_operand.hbm [shape: f32[2,8,10], index: 9, kind: output, shape index: {}]  }
   0x1   :  { %15 = vsyncpa [#allocation6], 0 }
   0x2   :  { %16 = vsyncpa [#allocation4], 0  ;;  %s27_s11 = sshll.u32 %s1729_s3, 4  ;;  %s1562_s12 = smov [#allocation2]   ;;  %s28_s11 = int_to_ptr.hbm [resolvable:$true] %s27_s11 }
   0x3   :  { %s29_s13 = sshll.u32 %s1562_s12, 4  ;;  %s42_s16 = sshll.u32 %s1731_s5, 4  ;;  %s30_s13 = int_to_ptr.vmem [resolvable:$true] %s29_s13  ;;  %s43_s16 = int_to_ptr.hbm [resolvable:$true] %s42_s16 }
   0x4   :  { %s1563_s17 = smov 128   ;;  %s1564_s18 = smov 8  }
   0x5   :  { %35 = dma.hbm_to_vmem [thread:$0]  %s28_s11, 8192, %s30_s13, [#allocation3], %s1563_s17, %s1563_s17, %s1564_s18  }
   0x6   :  { %s1565_s19 = smov [#allocation5]   ;;  %s1566_s21 = smov 64  }
   0x7   :  { %s44_s20 = sshll.u32 %s1565_s19, 4  ;;  %s1567_s3 = smov 4   ;;  %s45_s20 = int_to_ptr.vmem [resolvable:$true] %s44_s20 }
   0x8   :  { %50 = dma.hbm_to_vmem [thread:$0]  %s43_s16, 2048, %s45_s20, [#allocation6], %s1566_s21, %s1566_s21, %s1567_s3  }
   0x9   :  { %1556 = dma.done.wait [#allocation3], 8192  }
   0xa   :  { %1557 = vsyncadd [#allocation3], 4294959104 }
   0xb   :  { %1558 = dma.done.wait [#allocation6], 2048  }
   0xc   :  { %1559 = vsyncadd [#allocation6], 4294965248  ;;  %vm109_vm0 = vcmask 1044480   ;;  %v1005_v0 = vld [vmem:[%s1727_s1] sm:$0xf]  ;;  %v67_v10 = vld [vmem:[%s1726_s0 + $0x8] sm:$0xff] }
   0xd   :  { %v1377_v1 = vld [vmem:[%s1727_s1 + $0xc] sm:$0x10]  ;;  %v1375_v2 = vld [vmem:[%s1727_s1 + $0x4] sm:$0xf]  ;;  %v1007_v4 = vld [vmem:[%s1727_s1 + $0x10] sm:$0x10]  ;;  %v69_v14 = vpack.c.bf16 %v67_v10, %v67_v10 }
   0xe   :  { %v1006_v3 = vor.u32 %v1377_v1, %v1005_v0  ;;  %v1013_v5 = vld [vmem:[%s1727_s1 + $0x8] sm:$0xf]  ;;  %v1378_v6 = vld [vmem:[%s1727_s1 + $0x14] sm:$0x10]  ;;  %v1010_v7 = vor.u32 %v1375_v2, %v1007_v4  ;;  %v66_v9 = vld [vmem:[%s1726_s0] sm:$0xff]  ;;  %vm105_vm1 = vcmask 80896  }
   0xf   :  { %v1014_v8 = vor.u32 %v1378_v6, %v1013_v5  ;;  %v1376_v11 = vld [vmem:[%s1727_s1 + $0xc] sm:$0xf]  ;;  %v68_v13 = vpack.c.bf16 %v66_v9, %v66_v9  ;;  %v1015_v15 = vld [vmem:[%s1727_s1 + $0x18] sm:$0x10]  ;;  %v1145_v16 = vld [vmem:[#allocation2 + $0xf0] sm:$0xf]  ;;  %v87_v23 = vunpack.c.l.b16 %v69_v14 }
  0x10   :  { %v111_v12 = vsel %vm109_vm0, %v1006_v3, 0  ;;  %v114_v17 = vsel %vm109_vm0, %v1010_v7, 0  ;;  %v1018_v19 = vor.u32 %v1376_v11, %v1015_v15  ;;  %v1410_v20 = vld [vmem:[#allocation2 + $0xf4] sm:$0xf0]  ;;  %v1137_v21 = vld [vmem:[#allocation2 + $0xe0] sm:$0xf] }
  0x11   :  { %129 = vmatpush.bf16.msra.mxu3 %v111_v12  ;;  %v117_v18 = vsel %vm109_vm0, %v1014_v8, 0  ;;  %143 = vmatpush.bf16.msra.mxu1 %v114_v17  ;;  %v86_v22 = vunpack.c.l.b16 %v68_v13  ;;  %v1146_v24 = vor.u32 %v1410_v20, %v1145_v16  ;;  %v1408_v25 = vld [vmem:[#allocation2 + $0xe4] sm:$0xf0]  ;;  %v1081_v26 = vld [vmem:[#allocation2 + $0x70] sm:$0xf]  ;;  %s989_s0 = sshll.u32 %s1735_s9, 4  ;;  %s990_s0 = int_to_ptr.hbm [resolvable:$true] %s989_s0 }
  0x12   :  { %157 = vmatpush.bf16.msra.mxu2 %v117_v18  ;;  %v1394_v27 = vld [vmem:[#allocation2 + $0x74] sm:$0xf0]  ;;  %v120_v28 = vsel %vm109_vm0, %v1018_v19, 0  ;;  %v1209_v30 = vld [vmem:[#allocation2 + $0x170] sm:$0xf]  ;;  %v1138_v33 = vor.u32 %v1408_v25, %v1137_v21 }
  0x13   :  { %v1082_v29 = vor.u32 %v1394_v27, %v1081_v26  ;;  %v1426_v31 = vld [vmem:[#allocation2 + $0x174] sm:$0xf0]  ;;  %v1662_v32 = vpack.c.b16 %v87_v23, %v86_v22  ;;  %v1129_v35 = vld [vmem:[#allocation2 + $0xd0] sm:$0xf]  ;;  %v1073_v37 = vld [vmem:[#allocation2 + $0x60] sm:$0xf] }
  0x14   :  { %v1210_v34 = vor.u32 %v1426_v31, %v1209_v30  ;;  %v1406_v36 = vld [vmem:[#allocation2 + $0xd4] sm:$0xf0]  ;;  %v1392_v38 = vld [vmem:[#allocation2 + $0x64] sm:$0xf0]  ;;  %v1201_v39 = vld [vmem:[#allocation2 + $0x160] sm:$0xf] }
  0x15   :  { %171 = vmatpush.bf16.msrb.mxu3 %v120_v28  ;;  %594 = vmatpush.bf16.msrb.mxu1 %v1146_v24  ;;  %v1424_v40 = vld [vmem:[#allocation2 + $0x164] sm:$0xf0]  ;;  %v1074_v41 = vor.u32 %v1392_v38, %v1073_v37  ;;  %v1065_v42 = vld [vmem:[#allocation2 + $0x50] sm:$0xf]  ;;  %v1390_v43 = vld [vmem:[#allocation2 + $0x54] sm:$0xf0]  ;;  %v1130_v44 = vor.u32 %v1406_v36, %v1129_v35 }
  0x16   :  { %580 = vmatpush.bf16.msra.mxu0 %v1082_v29  ;;  %1019 = vmatmul.msk.bf16.vlgmr.msra.gmra.mxu3 %vm105_vm1, %v1662_v32  ;;  %v1202_v45 = vor.u32 %v1424_v40, %v1201_v39  ;;  %v1121_v46 = vld [vmem:[#allocation2 + $0xc0] sm:$0xf]  ;;  %v1404_v47 = vld [vmem:[#allocation2 + $0xc4] sm:$0xf0]  ;;  %v1066_v48 = vor.u32 %v1390_v43, %v1065_v42  ;;  %v1193_v49 = vld [vmem:[#allocation2 + $0x150] sm:$0xf] }
  0x17   :  { %1020 = vmatmul.msk.bf16.vlgmr.msra.gmra.mxu1 %vm105_vm1, %v1662_v32  ;;  %1021 = vmatmul.msk.bf16.vlgmr.msra.gmra.mxu2 %vm105_vm1, %v1662_v32  ;;  %v1422_v50 = vld [vmem:[#allocation2 + $0x154] sm:$0xf0]  ;;  %v1057_v51 = vld [vmem:[#allocation2 + $0x40] sm:$0xf]  ;;  %v1388_v52 = vld [vmem:[#allocation2 + $0x44] sm:$0xf0]  ;;  %v1122_v53 = vor.u32 %v1404_v47, %v1121_v46 }
  0x18   :  { %608 = vmatpush.bf16.msrb.mxu2 %v1210_v34  ;;  %v1194_v54 = vor.u32 %v1422_v50, %v1193_v49  ;;  %v1113_v55 = vld [vmem:[#allocation2 + $0xb0] sm:$0xf]  ;;  %v1442_v57 = vld [vmem:[#allocation2 + $0x1f4] sm:$0xf0]  ;;  %v1058_v59 = vor.u32 %v1388_v52, %v1057_v51  ;;  %v1185_v60 = vld [vmem:[#allocation2 + $0x140] sm:$0xf] }
  0x19   :  { %595 = vmatpush.bf16.msrb.mxu1 %v1138_v33  ;;  %v1273_v56 = vld [vmem:[#allocation2 + $0x1f0] sm:$0xf]  ;;  %v1402_v58 = vld [vmem:[#allocation2 + $0xb4] sm:$0xf0]  ;;  %v1420_v61 = vld [vmem:[#allocation2 + $0x144] sm:$0xf0] }
  0x1a   :  { %581 = vmatpush.bf16.msra.mxu0 %v1074_v41  ;;  %v1274_v62 = vor.u32 %v1442_v57, %v1273_v56  ;;  %v1049_v63 = vld [vmem:[#allocation2 + $0x30] sm:$0xf]  ;;  %v1386_v0 = vld [vmem:[#allocation2 + $0x34] sm:$0xf0]  ;;  %v1265_v1 = vld [vmem:[#allocation2 + $0x1e0] sm:$0xf]  ;;  %v1114_v3 = vor.u32 %v1402_v58, %v1113_v55  ;;  %v1186_v4 = vor.u32 %v1420_v61, %v1185_v60 }
  0x1b   :  { %v1440_v2 = vld [vmem:[#allocation2 + $0x1e4] sm:$0xf0]  ;;  %v1105_v5 = vld [vmem:[#allocation2 + $0xa0] sm:$0xf]  ;;  %v1050_v8 = vor.u32 %v1386_v0, %v1049_v63  ;;  %v1177_v9 = vld [vmem:[#allocation2 + $0x130] sm:$0xf] }
  0x1c   :  { %609 = vmatpush.bf16.msrb.mxu2 %v1202_v45  ;;  %622 = vmatpush.bf16.msra.mxu3 %v1274_v62  ;;  %v1266_v6 = vor.u32 %v1440_v2, %v1265_v1  ;;  %v1400_v7 = vld [vmem:[#allocation2 + $0xa4] sm:$0xf0]  ;;  %v1418_v10 = vld [vmem:[#allocation2 + $0x134] sm:$0xf0]  ;;  %v1041_v11 = vld [vmem:[#allocation2 + $0x20] sm:$0xf] }
  0x1d   :  { %596 = vmatpush.bf16.msrb.mxu1 %v1130_v44  ;;  %v1384_v12 = vld [vmem:[#allocation2 + $0x24] sm:$0xf0]  ;;  %v1106_v13 = vor.u32 %v1400_v7, %v1105_v5  ;;  %v1178_v14 = vor.u32 %v1418_v10, %v1177_v9  ;;  %v1097_v15 = vld [vmem:[#allocation2 + $0x90] sm:$0xf]  ;;  %v1398_v16 = vld [vmem:[#allocation2 + $0x94] sm:$0xf0] }
  0x1e   :  { %582 = vmatpush.bf16.msra.mxu0 %v1066_v48  ;;  %v1042_v17 = vor.u32 %v1384_v12, %v1041_v11  ;;  %v1169_v18 = vld [vmem:[#allocation2 + $0x120] sm:$0xf]  ;;  %v1416_v19 = vld [vmem:[#allocation2 + $0x124] sm:$0xf0]  ;;  %v1098_v20 = vor.u32 %v1398_v16, %v1097_v15  ;;  %v1409_v25 = vld [vmem:[#allocation2 + $0xf4] sm:$0xf] }
  0x1f   :  { %v1170_v21 = vor.u32 %v1416_v19, %v1169_v18  ;;  %v1089_v22 = vld [vmem:[#allocation2 + $0x80] sm:$0xf]  ;;  %v1396_v23 = vld [vmem:[#allocation2 + $0x84] sm:$0xf0]  ;;  %v1147_v26 = vld [vmem:[#allocation2 + $0xf8] sm:$0xf0] }
  0x20   :  { %610 = vmatpush.bf16.msrb.mxu2 %v1194_v54  ;;  %623 = vmatpush.bf16.msra.mxu3 %v1266_v6  ;;  %v1090_v24 = vor.u32 %v1396_v23, %v1089_v22  ;;  %v1150_v27 = vor.u32 %v1409_v25, %v1147_v26  ;;  %v1033_v28 = vld [vmem:[#allocation2 + $0x10] sm:$0xf]  ;;  %v1382_v29 = vld [vmem:[#allocation2 + $0x14] sm:$0xf0]  ;;  %v1407_v37 = vld [vmem:[#allocation2 + $0xe4] sm:$0xf] }
  0x21   :  { %597 = vmatpush.bf16.msrb.mxu1 %v1122_v53  ;;  %v1161_v30 = vld [vmem:[#allocation2 + $0x110] sm:$0xf]  ;;  %v1034_v31 = vor.u32 %v1382_v29, %v1033_v28  ;;  %v1414_v33 = vld [vmem:[#allocation2 + $0x114] sm:$0xf0]  ;;  %v1139_v38 = vld [vmem:[#allocation2 + $0xe8] sm:$0xf0] }
  0x22   :  { %583 = vmatpush.bf16.msra.mxu0 %v1058_v59  ;;  %v1438_v34 = vld [vmem:[#allocation2 + $0x1d4] sm:$0xf0]  ;;  %v1162_v35 = vor.u32 %v1414_v33, %v1161_v30  ;;  %v1142_v39 = vor.u32 %v1407_v37, %v1139_v38  ;;  %v1025_v40 = vld [vmem:[#allocation2] sm:$0xf]  ;;  %v1380_v41 = vld [vmem:[#allocation2 + $0x4] sm:$0xf0] }
  0x23   :  { %v1153_v42 = vld [vmem:[#allocation2 + $0x100] sm:$0xf]  ;;  %v1026_v43 = vor.u32 %v1380_v41, %v1025_v40  ;;  %v1412_v44 = vld [vmem:[#allocation2 + $0x104] sm:$0xf0]  ;;  %v1393_v49 = vld [vmem:[#allocation2 + $0x74] sm:$0xf] }
  0x24   :  { %611 = vmatpush.bf16.msrb.mxu2 %v1186_v4  ;;  %v1249_v45 = vld [vmem:[#allocation2 + $0x1c0] sm:$0xf]  ;;  %v1436_v46 = vld [vmem:[#allocation2 + $0x1c4] sm:$0xf0]  ;;  %v1154_v47 = vor.u32 %v1412_v44, %v1153_v42  ;;  %v1083_v50 = vld [vmem:[#allocation2 + $0x78] sm:$0xf0] }
  0x25   :  { %598 = vmatpush.bf16.msrb.mxu1 %v1114_v3  ;;  %v1250_v48 = vor.u32 %v1436_v46, %v1249_v45  ;;  %v1086_v51 = vor.u32 %v1393_v49, %v1083_v50  ;;  %v1425_v52 = vld [vmem:[#allocation2 + $0x174] sm:$0xf]  ;;  %v1211_v53 = vld [vmem:[#allocation2 + $0x178] sm:$0xf0]  ;;  %v1241_v57 = vld [vmem:[#allocation2 + $0x1b0] sm:$0xf] }
  0x26   :  { %584 = vmatpush.bf16.msra.mxu0 %v1050_v8  ;;  %1022 = vmatmul.msk.bf16.vlgmr.msrb.gmra.mxu3 %vm105_vm1, %v1662_v32  ;;  %v1257_v32 = vld [vmem:[#allocation2 + $0x1d0] sm:$0xf]  ;;  %v1405_v54 = vld [vmem:[#allocation2 + $0xd4] sm:$0xf]  ;;  %v1214_v55 = vor.u32 %v1425_v52, %v1211_v53  ;;  %v1131_v56 = vld [vmem:[#allocation2 + $0xd8] sm:$0xf0] }
  0x27   :  { %v1258_v36 = vor.u32 %v1438_v34, %v1257_v32  ;;  %v1434_v58 = vld [vmem:[#allocation2 + $0x1b4] sm:$0xf0]  ;;  %v1134_v59 = vor.u32 %v1405_v54, %v1131_v56  ;;  %v1391_v61 = vld [vmem:[#allocation2 + $0x64] sm:$0xf]  ;;  %v1075_v62 = vld [vmem:[#allocation2 + $0x68] sm:$0xf0] }
  0x28   :  { %612 = vmatpush.bf16.msrb.mxu2 %v1178_v14  ;;  %v1242_v60 = vor.u32 %v1434_v58, %v1241_v57  ;;  %v1423_v63 = vld [vmem:[#allocation2 + $0x164] sm:$0xf]  ;;  %v1078_v0 = vor.u32 %v1391_v61, %v1075_v62  ;;  %v1203_v1 = vld [vmem:[#allocation2 + $0x168] sm:$0xf0]  ;;  %v1233_v6 = vld [vmem:[#allocation2 + $0x1a0] sm:$0xf] }
  0x29   :  { %599 = vmatpush.bf16.msrb.mxu1 %v1106_v13  ;;  %624 = vmatpush.bf16.msra.mxu3 %v1258_v36  ;;  %v1206_v2 = vor.u32 %v1423_v63, %v1203_v1  ;;  %v1403_v3 = vld [vmem:[#allocation2 + $0xc4] sm:$0xf]  ;;  %v1123_v4 = vld [vmem:[#allocation2 + $0xc8] sm:$0xf0]  ;;  %v1432_v7 = vld [vmem:[#allocation2 + $0x1a4] sm:$0xf0] }
  0x2a   :  { %585 = vmatpush.bf16.msra.mxu0 %v1042_v17  ;;  %v1126_v5 = vor.u32 %v1403_v3, %v1123_v4  ;;  %v1234_v8 = vor.u32 %v1432_v7, %v1233_v6  ;;  %v1389_v9 = vld [vmem:[#allocation2 + $0x54] sm:$0xf]  ;;  %v1067_v10 = vld [vmem:[#allocation2 + $0x58] sm:$0xf0]  ;;  %v1225_v18 = vld [vmem:[#allocation2 + $0x190] sm:$0xf] }
  0x2b   :  { %v1421_v11 = vld [vmem:[#allocation2 + $0x154] sm:$0xf]  ;;  %v1070_v12 = vor.u32 %v1389_v9, %v1067_v10  ;;  %v1195_v13 = vld [vmem:[#allocation2 + $0x158] sm:$0xf0]  ;;  %v1430_v19 = vld [vmem:[#allocation2 + $0x194] sm:$0xf0] }
  0x2c   :  { %613 = vmatpush.bf16.msrb.mxu2 %v1170_v21  ;;  %v1198_v14 = vor.u32 %v1421_v11, %v1195_v13  ;;  %v1401_v15 = vld [vmem:[#allocation2 + $0xb4] sm:$0xf]  ;;  %v1115_v16 = vld [vmem:[#allocation2 + $0xb8] sm:$0xf0]  ;;  %v1387_v21 = vld [vmem:[#allocation2 + $0x44] sm:$0xf] }
  0x2d   :  { %600 = vmatpush.bf16.msrb.mxu1 %v1098_v20  ;;  %625 = vmatpush.bf16.msra.mxu3 %v1250_v48  ;;  %v1118_v17 = vor.u32 %v1401_v15, %v1115_v16  ;;  %v1226_v20 = vor.u32 %v1430_v19, %v1225_v18  ;;  %v1059_v22 = vld [vmem:[#allocation2 + $0x48] sm:$0xf0]  ;;  %v1419_v23 = vld [vmem:[#allocation2 + $0x144] sm:$0xf]  ;;  %v1217_v30 = vld [vmem:[#allocation2 + $0x180] sm:$0xf] }
  0x2e   :  { %586 = vmatpush.bf16.msra.mxu0 %v1034_v31  ;;  %v1187_v25 = vld [vmem:[#allocation2 + $0x148] sm:$0xf0]  ;;  %v1428_v31 = vld [vmem:[#allocation2 + $0x184] sm:$0xf0]  ;;  %v1385_v32 = vld [vmem:[#allocation2 + $0x34] sm:$0xf] }
  0x2f   :  { %v1190_v26 = vor.u32 %v1419_v23, %v1187_v25  ;;  %v1107_v28 = vld [vmem:[#allocation2 + $0xa8] sm:$0xf0]  ;;  %v1218_v33 = vor.u32 %v1428_v31, %v1217_v30  ;;  %v1051_v34 = vld [vmem:[#allocation2 + $0x38] sm:$0xf0]  ;;  %v1441_v38 = vld [vmem:[#allocation2 + $0x1f4] sm:$0xf] }
  0x30   :  { %614 = vmatpush.bf16.msrb.mxu2 %v1162_v35  ;;  %v1417_v35 = vld [vmem:[#allocation2 + $0x134] sm:$0xf]  ;;  %v1054_v36 = vor.u32 %v1385_v32, %v1051_v34  ;;  %v1179_v37 = vld [vmem:[#allocation2 + $0x138] sm:$0xf0]  ;;  %v1383_v45 = vld [vmem:[#allocation2 + $0x24] sm:$0xf] }
  0x31   :  { %601 = vmatpush.bf16.msrb.mxu1 %v1090_v24  ;;  %626 = vmatpush.bf16.msra.mxu3 %v1242_v60  ;;  %v1062_v24 = vor.u32 %v1387_v21, %v1059_v22  ;;  %v1182_v40 = vor.u32 %v1417_v35, %v1179_v37  ;;  %v1397_v42 = vld [vmem:[#allocation2 + $0x94] sm:$0xf]  ;;  %v1043_v46 = vld [vmem:[#allocation2 + $0x28] sm:$0xf0]  ;;  %v1439_v50 = vld [vmem:[#allocation2 + $0x1e4] sm:$0xf] }
  0x32   :  { %587 = vmatpush.bf16.msra.mxu0 %v1026_v43  ;;  %v1099_v43 = vld [vmem:[#allocation2 + $0x98] sm:$0xf0]  ;;  %v1046_v48 = vor.u32 %v1383_v45, %v1043_v46  ;;  %v1171_v49 = vld [vmem:[#allocation2 + $0x128] sm:$0xf0]  ;;  %v1395_v54 = vld [vmem:[#allocation2 + $0x84] sm:$0xf] }
  0x33   :  { %v1102_v44 = vor.u32 %v1397_v42, %v1099_v43  ;;  %v1381_v57 = vld [vmem:[#allocation2 + $0x14] sm:$0xf]  ;;  %v1035_v58 = vld [vmem:[#allocation2 + $0x18] sm:$0xf0]  ;;  %v1027_v6 = vld [vmem:[#allocation2 + $0x8] sm:$0xf0] }
  0x34   :  { %615 = vmatpush.bf16.msrb.mxu2 %v1154_v47  ;;  %v1415_v47 = vld [vmem:[#allocation2 + $0x124] sm:$0xf]  ;;  %v1038_v60 = vor.u32 %v1381_v57, %v1035_v58  ;;  %v1163_v61 = vld [vmem:[#allocation2 + $0x118] sm:$0xf0]  ;;  %v1437_v62 = vld [vmem:[#allocation2 + $0x1d4] sm:$0xf] }
  0x35   :  { %650 = vmatpush.bf16.msra.mxu1 %v1150_v27  ;;  %627 = vmatpush.bf16.msra.mxu3 %v1234_v8  ;;  %v1399_v27 = vld [vmem:[#allocation2 + $0xa4] sm:$0xf]  ;;  %v1174_v52 = vor.u32 %v1415_v47, %v1171_v49  ;;  %v1259_v63 = vld [vmem:[#allocation2 + $0x1d8] sm:$0xf0]  ;;  %v1155_v9 = vld [vmem:[#allocation2 + $0x108] sm:$0xf0] }
  0x36   :  { %636 = vmatpush.bf16.msrb.mxu0 %v1086_v51  ;;  %v1110_v29 = vor.u32 %v1399_v27, %v1107_v28  ;;  %v1267_v51 = vld [vmem:[#allocation2 + $0x1e8] sm:$0xf0]  ;;  %v1411_v7 = vld [vmem:[#allocation2 + $0x104] sm:$0xf]  ;;  %v1243_v15 = vld [vmem:[#allocation2 + $0x1b8] sm:$0xf0] }
  0x37   :  { %v1270_v53 = vor.u32 %v1439_v50, %v1267_v51  ;;  %v1435_v10 = vld [vmem:[#allocation2 + $0x1c4] sm:$0xf]  ;;  %v1251_v11 = vld [vmem:[#allocation2 + $0x1c8] sm:$0xf0]  ;;  %v1429_v28 = vld [vmem:[#allocation2 + $0x194] sm:$0xf] }
  0x38   :  { %664 = vmatpush.bf16.msra.mxu2 %v1214_v55  ;;  %v1091_v55 = vld [vmem:[#allocation2 + $0x88] sm:$0xf0]  ;;  %v1254_v13 = vor.u32 %v1435_v10, %v1251_v11  ;;  %v1431_v19 = vld [vmem:[#allocation2 + $0x1a4] sm:$0xf]  ;;  %v1449_v57 = vld [vmem:[#allocation5 + $0x30] sm:$0xff] }
  0x39   :  { %651 = vmatpush.bf16.msra.mxu1 %v1142_v39  ;;  %628 = vmatpush.bf16.msra.mxu3 %v1226_v20  ;;  %v1275_v39 = vld [vmem:[#allocation2 + $0x1f8] sm:$0xf0]  ;;  %v1094_v56 = vor.u32 %v1395_v54, %v1091_v55  ;;  %v1235_v20 = vld [vmem:[#allocation2 + $0x1a8] sm:$0xf0]  ;;  %v1427_v35 = vld [vmem:[#allocation2 + $0x184] sm:$0xf] }
  0x3a   :  { %637 = vmatpush.bf16.msrb.mxu0 %v1078_v0  ;;  %v1278_v41 = vor.u32 %v1441_v38, %v1275_v39  ;;  %v1675_v0 = vld [vmem:[%s1728_s2] sm:$0xf]  ;;  %v1448_v58 = vld [vmem:[#allocation5 + $0x28] sm:$0xff] }
  0x3b   :  { %v77_v3 = vperm.slane %v1675_v0, 1  ;;  %v78_v22 = vperm.slane %v1675_v0, 2  ;;  %v79_v49 = vperm.slane %v1675_v0, 3  ;;  %v254_v10 = vld [vmem:[%s1730_s4] sm:$0x3] }
  0x3c   :  { %665 = vmatpush.bf16.msra.mxu2 %v1206_v2  ;;  %v1262_v2 = vor.u32 %v1437_v62, %v1259_v63  ;;  %v1445_v62 = vld [vmem:[#allocation5 + $0x10] sm:$0xff] }
  0x3d   :  { %652 = vmatpush.bf16.msra.mxu1 %v1134_v59  ;;  %629 = vmatpush.bf16.msra.mxu3 %v1218_v33  ;;  %v1413_v59 = vld [vmem:[#allocation2 + $0x114] sm:$0xf] }
  0x3e   :  { %638 = vmatpush.bf16.msrb.mxu0 %v1070_v12  ;;  %v1166_v1 = vor.u32 %v1413_v59, %v1163_v61  ;;  %v1158_v12 = vor.u32 %v1411_v7, %v1155_v9  ;;  %v1447_v59 = vld [vmem:[#allocation5 + $0x20] sm:$0xff]  ;;  %v1458_v61 = vld [vmem:[#allocation5 + $0x78] sm:$0xff]  ;;  %v1457_v63 = vld [vmem:[#allocation5 + $0x70] sm:$0xff] }
  0x3f   :  { %v1452_v9 = vld [vmem:[#allocation5 + $0x48] sm:$0xff] }
  0x40   :  { %666 = vmatpush.bf16.msra.mxu2 %v1198_v14  ;;  %v1433_v14 = vld [vmem:[#allocation2 + $0x1b4] sm:$0xf] }
  0x41   :  { %653 = vmatpush.bf16.msra.mxu1 %v1126_v5  ;;  %678 = vmatpush.bf16.msrb.mxu3 %v1278_v41  ;;  %v1379_v5 = vld [vmem:[#allocation2 + $0x4] sm:$0xf] }
  0x42   :  { %639 = vmatpush.bf16.msrb.mxu0 %v1062_v24  ;;  %v1030_v8 = vor.u32 %v1379_v5, %v1027_v6  ;;  %v1238_v24 = vor.u32 %v1431_v19, %v1235_v20  ;;  %v1453_v6 = vld [vmem:[#allocation5 + $0x50] sm:$0xff] }
  0x44   :  { %667 = vmatpush.bf16.msra.mxu2 %v1190_v26  ;;  %v76_v26 = vperm.slane %v1675_v0, 0  ;;  %v1444_v0 = vld [vmem:[#allocation5 + $0x8] sm:$0xff] }
  0x45   :  { %654 = vmatpush.bf16.msra.mxu1 %v1118_v17  ;;  %679 = vmatpush.bf16.msrb.mxu3 %v1270_v53  ;;  %v1246_v17 = vor.u32 %v1433_v14, %v1243_v15 }
  0x46   :  { %640 = vmatpush.bf16.msrb.mxu0 %v1054_v36  ;;  %v1219_v36 = vld [vmem:[#allocation2 + $0x188] sm:$0xf0] }
  0x47   :  { %v1222_v42 = vor.u32 %v1427_v35, %v1219_v36 }
  0x48   :  { %668 = vmatpush.bf16.msra.mxu2 %v1182_v40 }
  0x49   :  { %655 = vmatpush.bf16.msra.mxu1 %v1110_v29  ;;  %680 = vmatpush.bf16.msrb.mxu3 %v1262_v2  ;;  %v1227_v29 = vld [vmem:[#allocation2 + $0x198] sm:$0xf0]  ;;  %v1443_v2 = vld [vmem:[#allocation5] sm:$0xff] }
  0x4a   :  { %641 = vmatpush.bf16.msrb.mxu0 %v1046_v48  ;;  %v1230_v33 = vor.u32 %v1429_v28, %v1227_v29  ;;  %v257_v29 = vperm.slane %v254_v10, 1 }
  0x4c   :  { %669 = vmatpush.bf16.msra.mxu2 %v1174_v52 }
  0x4d   :  { %656 = vmatpush.bf16.msra.mxu1 %v1102_v44  ;;  %681 = vmatpush.bf16.msrb.mxu3 %v1254_v13  ;;  %v1451_v13 = vld [vmem:[#allocation5 + $0x40] sm:$0xff] }
  0x4e   :  { %642 = vmatpush.bf16.msrb.mxu0 %v1038_v60  ;;  %v1446_v60 = vld [vmem:[#allocation5 + $0x18] sm:$0xff] }
  0x50   :  { %670 = vmatpush.bf16.msra.mxu2 %v1166_v1  ;;  %v1456_v1 = vld [vmem:[#allocation5 + $0x68] sm:$0xff] }
  0x51   :  { %657 = vmatpush.bf16.msra.mxu1 %v1094_v56  ;;  %682 = vmatpush.bf16.msrb.mxu3 %v1246_v17  ;;  %v1450_v56 = vld [vmem:[#allocation5 + $0x38] sm:$0xff] }
  0x52   :  { %643 = vmatpush.bf16.msrb.mxu0 %v1030_v8 }
  0x54   :  { %671 = vmatpush.bf16.msra.mxu2 %v1158_v12  ;;  %v256_v12 = vperm.slane %v254_v10, 0 }
  0x55   :  { %683 = vmatpush.bf16.msrb.mxu3 %v1238_v24 }
  0x59   :  { %684 = vmatpush.bf16.msrb.mxu3 %v1230_v33 }
  0x5d   :  { %685 = vmatpush.bf16.msrb.mxu3 %v1222_v42 }
  0x94   :  { %v145_v4 = vpop.f32.mrf.mxu1 }
  0x95   :  { %v146_v16 = vadd.f32 %v145_v4, %v77_v3  ;;  %v1454_v4 = vld [vmem:[#allocation5 + $0x58] sm:$0xff] }
  0x97   :  { %v179_v25 = vmax.f32 %v146_v16, 0.0 }
  0x99   :  { %v131_v18 = vpop.f32.mrf.mxu3 }
  0x9a   :  { %v159_v21 = vpop.f32.mrf.mxu2  ;;  %v132_v32 = vadd.f32 %v131_v18, %v76_v26 }
  0x9b   :  { %v160_v31 = vadd.f32 %v159_v21, %v78_v22 }
  0x9c   :  { %v147_v23 = vpop.f32.mrf.mxu1  ;;  %v178_v43 = vmax.f32 %v132_v32, 0.0 }
  0x9d   :  { %v148_v27 = vadd.f32 %v147_v23, %v77_v3  ;;  %v180_v40 = vmax.f32 %v160_v31, 0.0  ;;  %v1455_v3 = vld [vmem:[#allocation5 + $0x60] sm:$0xff] }
  0x9f   :  { %v183_v30 = vmax.f32 %v148_v27, 0.0 }
  0xa1   :  { %v187_v34 = vpack.c.bf16 %v183_v30, %v179_v25  ;;  %v133_v37 = vpop.f32.mrf.mxu3 }
  0xa2   :  { %v134_v38 = vadd.f32 %v133_v37, %v76_v26  ;;  %v161_v39 = vpop.f32.mrf.mxu2 }
  0xa3   :  { %602 = vmatmul.bf16.vlgmr.msrb.gmra.mxu1 %v187_v34  ;;  %v162_v41 = vadd.f32 %v161_v39, %v78_v22 }
  0xa4   :  { %v182_v44 = vmax.f32 %v134_v38, 0.0  ;;  %844 = vmatpush.bf16.msrb.mxu1 %v1458_v61 }
  0xa5   :  { %v184_v45 = vmax.f32 %v162_v41, 0.0 }
  0xa6   :  { %v186_v46 = vpack.c.bf16 %v182_v44, %v178_v43 }
  0xa7   :  { %v188_v47 = vpack.c.bf16 %v184_v45, %v180_v40 }
  0xa8   :  { %588 = vmatmul.bf16.vlgmr.msra.gmra.mxu0 %v186_v46  ;;  %845 = vmatpush.bf16.msrb.mxu1 %v1457_v63 }
  0xa9   :  { %616 = vmatmul.bf16.vlgmr.msrb.gmra.mxu2 %v188_v47  ;;  %v173_v48 = vpop.f32.mrf.mxu3  ;;  %830 = vmatpush.bf16.msra.mxu0 %v1450_v56  ;;  %v1459_v56 = vld [vmem:[%s1733_s7] sm:$0xff] }
  0xaa   :  { %v174_v50 = vadd.f32 %v173_v48, %v79_v49 }
  0xac   :  { %v181_v53 = vmax.f32 %v174_v50, 0.0  ;;  %846 = vmatpush.bf16.msrb.mxu1 %v1456_v1  ;;  %v1465_v50 = vld [vmem:[%s1733_s7 + $0x30] sm:$0xff] }
  0xad   :  { %831 = vmatpush.bf16.msra.mxu0 %v1449_v57 }
  0xb0   :  { %847 = vmatpush.bf16.msrb.mxu1 %v1455_v3 }
  0xb1   :  { %v175_v51 = vpop.f32.mrf.mxu3  ;;  %832 = vmatpush.bf16.msra.mxu0 %v1448_v58 }
  0xb2   :  { %v176_v52 = vadd.f32 %v175_v51, %v79_v49  ;;  %v1466_v49 = vld [vmem:[%s1733_s7 + $0x38] sm:$0xff]  ;;  %v1464_v51 = vld [vmem:[%s1733_s7 + $0x28] sm:$0xff] }
  0xb3   :  { %658 = vmatmul.bf16.vlgmr.msra.gmra.mxu1 %v187_v34  ;;  %929 = vmatpush.bf16.msrb.mxu2 %v1466_v49 }
  0xb4   :  { %v185_v54 = vmax.f32 %v176_v52, 0.0  ;;  %848 = vmatpush.bf16.msrb.mxu1 %v1454_v4  ;;  %v1463_v52 = vld [vmem:[%s1733_s7 + $0x20] sm:$0xff] }
  0xb5   :  { %833 = vmatpush.bf16.msra.mxu0 %v1447_v59  ;;  %v1474_v59 = vld [vmem:[%s1732_s6] ss:$0 sm:$0xff]  ;;  %s1568_s6 = smov [#allocation7]  }
  0xb6   :  { %v189_v55 = vpack.c.bf16 %v185_v54, %v181_v53  ;;  %v1462_v53 = vld [vmem:[%s1733_s7 + $0x18] sm:$0xff]  ;;  %v1461_v54 = vld [vmem:[%s1733_s7 + $0x10] sm:$0xff] }
  0xb7   :  { %930 = vmatpush.bf16.msrb.mxu2 %v1465_v50 }
  0xb8   :  { %630 = vmatmul.bf16.vlgmr.msra.gmra.mxu3 %v189_v55  ;;  %644 = vmatmul.bf16.vlgmr.msrb.gmra.mxu0 %v186_v46 }
  0xb9   :  { %672 = vmatmul.bf16.vlgmr.msra.gmra.mxu2 %v188_v47  ;;  %834 = vmatpush.bf16.msra.mxu0 %v1446_v60 }
  0xba   :  { %849 = vmatpush.bf16.msrb.mxu1 %v1453_v6 }
  0xbb   :  { %931 = vmatpush.bf16.msrb.mxu2 %v1464_v51 }
  0xbd   :  { %835 = vmatpush.bf16.msra.mxu0 %v1445_v62 }
  0xbe   :  { %850 = vmatpush.bf16.msrb.mxu1 %v1452_v9 }
  0xbf   :  { %932 = vmatpush.bf16.msrb.mxu2 %v1463_v52 }
  0xc1   :  { %836 = vmatpush.bf16.msra.mxu0 %v1444_v0 }
  0xc2   :  { %851 = vmatpush.bf16.msrb.mxu1 %v1451_v13 }
  0xc3   :  { %933 = vmatpush.bf16.msrb.mxu2 %v1462_v53 }
  0xc5   :  { %837 = vmatpush.bf16.msra.mxu0 %v1443_v2 }
  0xc7   :  { %934 = vmatpush.bf16.msrb.mxu2 %v1461_v54 }
  0xc8   :  { %686 = vmatmul.bf16.vlgmr.msrb.gmra.mxu3 %v189_v55  ;;  %v1460_v55 = vld [vmem:[%s1733_s7 + $0x8] sm:$0xff]  ;;  %s987_s7 = sshll.u32 %s1568_s6, 4  ;;  %s988_s7 = int_to_ptr.vmem [resolvable:$true] %s987_s7 }
  0xcb   :  { %935 = vmatpush.bf16.msrb.mxu2 %v1460_v55 }
  0xcf   :  { %936 = vmatpush.bf16.msrb.mxu2 %v1459_v56 }
 0x120   :  { %v603_v7 = vpop.f32.mrf.mxu1 }
 0x125   :  { %v589_v5 = vpop.f32.mrf.mxu0 }
 0x126   :  { %v590_v14 = vadd.f32 %v589_v5, %v256_v12  ;;  %v1475_v5 = vld [vmem:[%s1734_s8] ss:$0 sm:$0xff] }
 0x128   :  { %v605_v15 = vpop.f32.mrf.mxu1  ;;  %v604_v19 = vadd.f32 %v603_v7, %v590_v14 }
 0x12c   :  { %v617_v8 = vpop.f32.mrf.mxu2 }
 0x12d   :  { %v591_v11 = vpop.f32.mrf.mxu0  ;;  %v618_v21 = vadd.f32 %v617_v8, %v604_v19 }
 0x12e   :  { %v592_v18 = vadd.f32 %v591_v11, %v256_v12 }
 0x130   :  { %v606_v22 = vadd.f32 %v605_v15, %v592_v18  ;;  %v659_v27 = vpop.f32.mrf.mxu1 }
 0x134   :  { %v619_v16 = vpop.f32.mrf.mxu2 }
 0x135   :  { %v645_v20 = vpop.f32.mrf.mxu0  ;;  %v620_v23 = vadd.f32 %v619_v16, %v606_v22 }
 0x136   :  { %v646_v34 = vadd.f32 %v645_v20, %v257_v29 }
 0x138   :  { %v660_v37 = vadd.f32 %v659_v27, %v646_v34  ;;  %v661_v38 = vpop.f32.mrf.mxu1 }
 0x13b   :  { %v631_v17 = vpop.f32.mrf.mxu3 }
 0x13c   :  { %v632_v24 = vadd.f32 %v631_v17, %v618_v21  ;;  %v673_v28 = vpop.f32.mrf.mxu2 }
 0x13d   :  { %v647_v32 = vpop.f32.mrf.mxu0  ;;  %v674_v40 = vadd.f32 %v673_v28, %v660_v37 }
 0x13e   :  { %v692_v30 = vmax.f32 %v632_v24, 0.0  ;;  %v648_v36 = vadd.f32 %v647_v32, %v257_v29 }
 0x140   :  { %v662_v41 = vadd.f32 %v661_v38, %v648_v36 }
 0x143   :  { %v633_v25 = vpop.f32.mrf.mxu3 }
 0x144   :  { %v634_v26 = vadd.f32 %v633_v25, %v620_v23  ;;  %v675_v39 = vpop.f32.mrf.mxu2 }
 0x145   :  { %v676_v42 = vadd.f32 %v675_v39, %v662_v41 }
 0x146   :  { %v694_v31 = vmax.f32 %v634_v26, 0.0 }
 0x148   :  { %v696_v33 = vpack.c.bf16 %v694_v31, %v692_v30 }
 0x14a   :  { %838 = vmatmul.bf16.vlgmr.msra.gmra.mxu0 %v696_v33 }
 0x14b   :  { %v687_v35 = vpop.f32.mrf.mxu3 }
 0x14c   :  { %v688_v43 = vadd.f32 %v687_v35, %v674_v40 }
 0x14e   :  { %v693_v46 = vmax.f32 %v688_v43, 0.0 }
 0x153   :  { %v689_v44 = vpop.f32.mrf.mxu3 }
 0x154   :  { %v690_v45 = vadd.f32 %v689_v44, %v676_v42 }
 0x156   :  { %v695_v47 = vmax.f32 %v690_v45, 0.0 }
 0x158   :  { %v697_v48 = vpack.c.bf16 %v695_v47, %v693_v46 }
 0x15a   :  { %852 = vmatmul.bf16.vlgmr.msrb.gmra.mxu1 %v697_v48 }
 0x1c7   :  { %v839_v57 = vpop.f32.mrf.mxu0 }
 0x1c8   :  { %v840_v61 = vadd.f32 %v1474_v59, %v839_v57 }
 0x1cf   :  { %v841_v60 = vpop.f32.mrf.mxu0 }
 0x1d0   :  { %v842_v62 = vadd.f32 %v1474_v59, %v841_v60 }
 0x1d7   :  { %v853_v58 = vpop.f32.mrf.mxu1 }
 0x1d8   :  { %v854_v63 = vadd.f32 %v853_v58, %v840_v61 }
 0x1da   :  { %v858_v2 = vmax.f32 %v854_v63, 0.0 }
 0x1df   :  { %v855_v0 = vpop.f32.mrf.mxu1 }
 0x1e0   :  { %v856_v1 = vadd.f32 %v855_v0, %v842_v62 }
 0x1e2   :  { %v859_v3 = vmax.f32 %v856_v1, 0.0 }
 0x1e4   :  { %v860_v4 = vpack.c.bf16 %v859_v3, %v858_v2 }
 0x1e6   :  { %937 = vmatmul.bf16.vlgmr.msrb.gmra.mxu2 %v860_v4 }
 0x269   :  { %v938_v6 = vpop.f32.mrf.mxu2 }
 0x26a   :  { %v939_v7 = vadd.f32 %v1475_v5, %v938_v6 }
 0x26c   :  { %v943_v8 = vsel %vm105_vm1, %v939_v7, -inf }
 0x26d   :  { %v944_v9 = vrot.slane %v943_v8, 4 }
 0x26f   :  { %v945_v10 = vmax.f32 %v943_v8, %v944_v9 }
 0x271   :  { %v946_v11 = vrot.slane %v945_v10, 2  ;;  %v940_v12 = vpop.f32.mrf.mxu2 }
 0x272   :  { %v941_v13 = vadd.f32 %v1475_v5, %v940_v12 }
 0x273   :  { %v947_v14 = vmax.f32 %v945_v10, %v946_v11 }
 0x274   :  { %v950_v15 = vsel %vm105_vm1, %v941_v13, -inf }
 0x275   :  { %v948_v16 = vrot.slane %v947_v14, 1  ;;  %v951_v17 = vrot.slane %v950_v15, 4 }
 0x277   :  { %v949_v18 = vmax.f32 %v947_v14, %v948_v16  ;;  %v952_v19 = vmax.f32 %v950_v15, %v951_v17 }
 0x279   :  { %v957_v20 = vsub.f32 %v939_v7, %v949_v18  ;;  %v953_v21 = vrot.slane %v952_v19, 2 }
 0x27b   :  { %v959_v22 = vmul.f32 1.442695, %v957_v20  ;;  %v954_v23 = vmax.f32 %v952_v19, %v953_v21 }
 0x27d   :  { %1476 = vpow2.f32 %v959_v22  ;;  %v955_v24 = vrot.slane %v954_v23, 1 }
 0x27f   :  { %v956_v25 = vmax.f32 %v954_v23, %v955_v24 }
 0x281   :  { %v958_v26 = vsub.f32 %v941_v13, %v956_v25 }
 0x283   :  { %v1477_v27 = vpop.eup %1476  ;;  %v961_v28 = vmul.f32 1.442695, %v958_v26 }
 0x284   :  { %v963_v29 = vsel %vm105_vm1, %v1477_v27, 0.0 }
 0x285   :  { %v964_v30 = vrot.slane %v963_v29, 4  ;;  %1478 = vpow2.f32 %v961_v28 }
 0x287   :  { %v965_v31 = vadd.f32 %v964_v30, %v963_v29 }
 0x289   :  { %v966_v33 = vrot.slane %v965_v31, 2 }
 0x28b   :  { %v1479_v32 = vpop.eup %1478  ;;  %v967_v34 = vadd.f32 %v966_v33, %v965_v31 }
 0x28c   :  { %v970_v35 = vsel %vm105_vm1, %v1479_v32, 0.0 }
 0x28d   :  { %v968_v36 = vrot.slane %v967_v34, 1  ;;  %v971_v37 = vrot.slane %v970_v35, 4 }
 0x28f   :  { %v969_v38 = vadd.f32 %v968_v36, %v967_v34  ;;  %v972_v39 = vadd.f32 %v971_v37, %v970_v35 }
 0x291   :  { %1480 = vrcp.f32 %v969_v38  ;;  %v973_v40 = vrot.slane %v972_v39, 2 }
 0x293   :  { %v974_v41 = vadd.f32 %v973_v40, %v972_v39 }
 0x295   :  { %v975_v42 = vrot.slane %v974_v41, 1 }
 0x297   :  { %v1481_v43 = vpop.eup %1480  ;;  %v976_v44 = vadd.f32 %v975_v42, %v974_v41 }
 0x298   :  { %v979_v45 = vmul.f32 %v1481_v43, %v1477_v27 }
 0x299   :  { %1482 = vrcp.f32 %v976_v44 }
 0x29a   :  { %981 = vst.msk [vmem:[#allocation7] sm:$0xff] %vm105_vm1, %v979_v45 }
 0x29f   :  { %v1483_v46 = vpop.eup %1482 }
 0x2a0   :  { %v980_v47 = vmul.f32 %v1483_v46, %v1479_v32 }
 0x2a2   :  { %982 = vst.msk [vmem:[#allocation7 + $0x8] sm:$0xff] %vm105_vm1, %v980_v47 }
 0x2a3   :  { %995 = dma.vmem_to_hbm [thread:$0]  %s988_s7, 256, %s990_s0, [#allocation4], %s1563_s17, %s1563_s17, %s1564_s18  }
 0x2a4   :  { %1560 = dma.done.wait [#allocation4], 256  }
 0x2a5   :  { %1561 = vsyncadd [#allocation4], 4294967040 }
 0x2a6   :  { %1000 = vsyncpa [#allocation3], 1 }
 0x2a7   :  { %1001 = vsyncpa [#allocation6], 1 }
 0x2a8   :  { %1002 = vsyncpa [#allocation4], 1 }

</bundles_post_ra>
